<compile_context>
chip_gen: v6e
topology: v6e:2x2x1
jax: 0.10.0
libtpu: 0.0.40
codegen_flags: <defaults>
</compile_context>

<pallas_src>
import functools

import jax
import jax.numpy as jnp
from jax.experimental import pallas as pl
from jax.experimental.pallas import tpu as pltpu


# Lane offsets inside the packed (1, 128) f32 parameter row.
_W0, _W1, _W2 = 0, 4, 8      # conv_w columns (4 output channels each)
_CB = 12                     # conv bias (4)
_X2 = 16                     # x2 (2)
_FW0, _FW1 = 18, 26          # fc_w columns (8 each)
_FB = 34                     # fc bias (8)
_PACK = 128


def fused_kernel(x_ref, p_ref, out_ref, *, inv_n_total):
    # x_ref: (Cin=3, 32, 128) -- each channel is 4 fully dense vregs.
    # p_ref: (1, 128) packed parameters.
    p = p_ref[...]

    # --- conv(1x1, pad=1) fused with global average pool (linearity trick) ---
    # Fold the 32-row sublane axis first (VALU elementwise adds + short sublane
    # reduce), then one 128-lane cross-lane reduce per channel (XLU).
    s1 = jnp.sum(x_ref[...], axis=1)                              # (3, 128)
    sx0 = jnp.sum(s1[0:1, :], axis=1, keepdims=True)              # (1, 1)
    sx1 = jnp.sum(s1[1:2, :], axis=1, keepdims=True)              # (1, 1)
    sx2 = jnp.sum(s1[2:3, :], axis=1, keepdims=True)              # (1, 1)

    # pooled[c] = (sum_i W[c,i] * sum_spatial(x[i])) / n_total + b[c]   -> (1, 4)
    pooled = ((p[:, _W0:_W0 + 4] * sx0
               + p[:, _W1:_W1 + 4] * sx1
               + p[:, _W2:_W2 + 4] * sx2) * inv_n_total
              + p[:, _CB:_CB + 4])

    # --- v2 = x2 @ pooled.reshape(2,2).T  (two tiny lane reductions) ---
    x2v = p[:, _X2:_X2 + 2]                                       # (1, 2)
    v2a = jnp.sum(x2v * pooled[:, 0:2], axis=1, keepdims=True)    # (1, 1)
    v2b = jnp.sum(x2v * pooled[:, 2:4], axis=1, keepdims=True)    # (1, 1)

    # --- v3 = fc(v2), emitted as a lane-dense (1, 8) row ---
    out_ref[...] = (v2a * p[:, _FW0:_FW0 + 8]
                    + v2b * p[:, _FW1:_FW1 + 8]
                    + p[:, _FB:_FB + 8])                          # (1, 8)


def model_forward(x1, x2, conv_w, conv_b, fc_w, fc_b):
    B, Cin, H, W = x1.shape
    Cout = conv_w.shape[0]
    Nout = fc_w.shape[0]
    assert B == 1 and Cin == 3 and Cout == 4 and Nout == 8 and x2.shape == (1, 2), \
        "kernel specialised to the module's hard-coded shapes"

    LANES = 128
    HW = H * W
    assert HW % LANES == 0
    rows = HW // LANES

    # Layout plumbing only: contiguous reshape of the image to lane-dense tiles.
    x = x1.reshape(Cin, rows, LANES)                              # (3, 32, 128)

    # Pack all tiny operands/parameters (42 f32 total) into one (1, 128) row.
    w2d = conv_w.reshape(Cout, Cin)
    packed = jnp.concatenate([
        w2d[:, 0], w2d[:, 1], w2d[:, 2],        # 12: conv_w, column-major
        conv_b,                                  # 4
        x2[0],                                   # 2
        fc_w[:, 0], fc_w[:, 1],                  # 16: fc_w, column-major
        fc_b,                                    # 8
    ])
    packed = jnp.pad(packed, (0, _PACK - packed.shape[0])).reshape(1, _PACK)

    # conv out is (H+2, W+2) because kernel=1, stride=1, padding=1.
    n_total = float((H + 2) * (W + 2))

    out = pl.pallas_call(
        functools.partial(fused_kernel, inv_n_total=1.0 / n_total),
        # Grid-less call: whole-array blocks, no 1-step pipeline machinery.
        in_specs=[
            pl.BlockSpec(memory_space=pltpu.MemorySpace.VMEM),    # image, 48 KiB
            pl.BlockSpec(memory_space=pltpu.MemorySpace.VMEM),    # packed params
        ],
        out_specs=pl.BlockSpec(memory_space=pltpu.MemorySpace.VMEM),
        out_shape=jax.ShapeDtypeStruct((1, Nout), jnp.float32),
        cost_estimate=pl.CostEstimate(
            flops=2 * Cin * HW + 512, transcendentals=0,
            bytes_accessed=Cin * HW * 4 + 1024),
    )(x, packed)

    # TODO(synk): `F.linear(v1, input=x2)` in the source is not runnable as written
    # (duplicate `input` arg, and adaptive_avg_pool2d(size=None) is invalid).
    # Interpreted as F.linear(input=x2, weight=v1) with the 4 pooled conv channels
    # reshaped to a (2, 2) weight so the chain type-checks with fc = Linear(2, 8).
    return out                                                    # (1, 8)


def reference_forward(x1, x2, conv_w, conv_b, fc_w, fc_b):
    """Pure-JAX reference of the same interpretation (for correctness check)."""
    w2d = conv_w.reshape(conv_w.shape[0], conv_w.shape[1])
    x_pad = jnp.pad(x1, ((0, 0), (0, 0), (1, 1), (1, 1)))
    y = jnp.einsum("oi,bihw->bohw", w2d, x_pad) + conv_b[None, :, None, None]
    pooled = y.mean(axis=(2, 3))                 # (1, 4)
    v1_w = pooled.reshape(2, 2)
    v2 = x2 @ v1_w.T
    return v2 @ fc_w.T + fc_b[None, :]


if __name__ == "__main__":
    key = jax.random.PRNGKey(0)
    k1, k2, k3, k4, k5, k6 = jax.random.split(key, 6)

    # inputs (as in the source module)
    x1 = jax.random.normal(k1, (1, 3, 64, 64), dtype=jnp.float32)
    x2 = jax.random.normal(k2, (1, 2), dtype=jnp.float32)

    # deterministic parameters (shapes from __init__; dropout is unused in forward)
    conv_w = 0.1 * jax.random.normal(k3, (4, 3, 1, 1), dtype=jnp.float32)
    conv_b = 0.1 * jax.random.normal(k4, (4,), dtype=jnp.float32)
    fc_w = 0.1 * jax.random.normal(k5, (8, 2), dtype=jnp.float32)
    fc_b = 0.1 * jax.random.normal(k6, (8,), dtype=jnp.float32)

    out = model_forward(x1, x2, conv_w, conv_b, fc_w, fc_b)
    out = jax.block_until_ready(out)

    ref = reference_forward(x1, x2, conv_w, conv_b, fc_w, fc_b)
    assert out.shape == (1, 8)
    assert jnp.allclose(out, ref, rtol=1e-4, atol=1e-4), (out, ref)

    print("KERNEL_OK")
</pallas_src>

<mosaic_0001>
module attributes {stable_mosaic.version = 11 : i64} {
  func.func @fused_kernel(%arg0: memref<3x32x128xf32, #tpu.memory_space<vmem>>, %arg1: memref<1x128xf32, #tpu.memory_space<vmem>>, %arg2: memref<1x8xf32, #tpu.memory_space<vmem>>) attributes {dimension_semantics = [], scalar_prefetch = 0 : i64, scratch_operands = 0 : i64, tpu.core_type = #tpu.core_type<tc>} {
    %c0 = arith.constant 0 : index
    %c0_0 = arith.constant 0 : index
    %0 = vector.load %arg1[%c0, %c0_0] : memref<1x128xf32, #tpu.memory_space<vmem>>, vector<1x128xf32>
    %c0_1 = arith.constant 0 : index
    %c0_2 = arith.constant 0 : index
    %c0_3 = arith.constant 0 : index
    %1 = vector.load %arg0[%c0_1, %c0_2, %c0_3] : memref<3x32x128xf32, #tpu.memory_space<vmem>>, vector<3x32x128xf32>
    %cst = arith.constant dense<0.000000e+00> : vector<3x128xf32>
    %2 = vector.multi_reduction <add>, %1, %cst [1] : vector<3x32x128xf32> to vector<3x128xf32>
    %3 = vector.extract_strided_slice %2 {offsets = [0, 0], sizes = [1, 128], strides = [1, 1]} : vector<3x128xf32> to vector<1x128xf32>
    %cst_4 = arith.constant dense<0.000000e+00> : vector<1xf32>
    %4 = vector.multi_reduction <add>, %3, %cst_4 [1] : vector<1x128xf32> to vector<1xf32>
    %5 = vector.shape_cast %4 : vector<1xf32> to vector<1x1xf32>
    %6 = vector.extract_strided_slice %2 {offsets = [1, 0], sizes = [1, 128], strides = [1, 1]} : vector<3x128xf32> to vector<1x128xf32>
    %cst_5 = arith.constant dense<0.000000e+00> : vector<1xf32>
    %7 = vector.multi_reduction <add>, %6, %cst_5 [1] : vector<1x128xf32> to vector<1xf32>
    %8 = vector.shape_cast %7 : vector<1xf32> to vector<1x1xf32>
    %9 = vector.extract_strided_slice %2 {offsets = [2, 0], sizes = [1, 128], strides = [1, 1]} : vector<3x128xf32> to vector<1x128xf32>
    %cst_6 = arith.constant dense<0.000000e+00> : vector<1xf32>
    %10 = vector.multi_reduction <add>, %9, %cst_6 [1] : vector<1x128xf32> to vector<1xf32>
    %11 = vector.shape_cast %10 : vector<1xf32> to vector<1x1xf32>
    %12 = vector.extract_strided_slice %0 {offsets = [0, 0], sizes = [1, 4], strides = [1, 1]} : vector<1x128xf32> to vector<1x4xf32>
    %13 = vector.broadcast %5 : vector<1x1xf32> to vector<1x4xf32>
    %14 = arith.mulf %12, %13 : vector<1x4xf32>
    %15 = vector.extract_strided_slice %0 {offsets = [0, 4], sizes = [1, 4], strides = [1, 1]} : vector<1x128xf32> to vector<1x4xf32>
    %16 = vector.broadcast %8 : vector<1x1xf32> to vector<1x4xf32>
    %17 = arith.mulf %15, %16 : vector<1x4xf32>
    %18 = arith.addf %14, %17 : vector<1x4xf32>
    %19 = vector.extract_strided_slice %0 {offsets = [0, 8], sizes = [1, 4], strides = [1, 1]} : vector<1x128xf32> to vector<1x4xf32>
    %20 = vector.broadcast %11 : vector<1x1xf32> to vector<1x4xf32>
    %21 = arith.mulf %19, %20 : vector<1x4xf32>
    %22 = arith.addf %18, %21 : vector<1x4xf32>
    %cst_7 = arith.constant 2.2956841E-4 : f32
    %23 = vector.broadcast %cst_7 : f32 to vector<1x4xf32>
    %24 = arith.mulf %22, %23 : vector<1x4xf32>
    %25 = vector.extract_strided_slice %0 {offsets = [0, 12], sizes = [1, 4], strides = [1, 1]} : vector<1x128xf32> to vector<1x4xf32>
    %26 = arith.addf %24, %25 : vector<1x4xf32>
    %27 = vector.extract_strided_slice %0 {offsets = [0, 16], sizes = [1, 2], strides = [1, 1]} : vector<1x128xf32> to vector<1x2xf32>
    %28 = vector.extract_strided_slice %26 {offsets = [0, 0], sizes = [1, 2], strides = [1, 1]} : vector<1x4xf32> to vector<1x2xf32>
    %29 = arith.mulf %27, %28 : vector<1x2xf32>
    %cst_8 = arith.constant dense<0.000000e+00> : vector<1xf32>
    %30 = vector.multi_reduction <add>, %29, %cst_8 [1] : vector<1x2xf32> to vector<1xf32>
    %31 = vector.shape_cast %30 : vector<1xf32> to vector<1x1xf32>
    %32 = vector.extract_strided_slice %26 {offsets = [0, 2], sizes = [1, 2], strides = [1, 1]} : vector<1x4xf32> to vector<1x2xf32>
    %33 = arith.mulf %27, %32 : vector<1x2xf32>
    %cst_9 = arith.constant dense<0.000000e+00> : vector<1xf32>
    %34 = vector.multi_reduction <add>, %33, %cst_9 [1] : vector<1x2xf32> to vector<1xf32>
    %35 = vector.shape_cast %34 : vector<1xf32> to vector<1x1xf32>
    %36 = vector.extract_strided_slice %0 {offsets = [0, 18], sizes = [1, 8], strides = [1, 1]} : vector<1x128xf32> to vector<1x8xf32>
    %37 = vector.broadcast %31 : vector<1x1xf32> to vector<1x8xf32>
    %38 = arith.mulf %37, %36 : vector<1x8xf32>
    %39 = vector.extract_strided_slice %0 {offsets = [0, 26], sizes = [1, 8], strides = [1, 1]} : vector<1x128xf32> to vector<1x8xf32>
    %40 = vector.broadcast %35 : vector<1x1xf32> to vector<1x8xf32>
    %41 = arith.mulf %40, %39 : vector<1x8xf32>
    %42 = arith.addf %38, %41 : vector<1x8xf32>
    %43 = vector.extract_strided_slice %0 {offsets = [0, 34], sizes = [1, 8], strides = [1, 1]} : vector<1x128xf32> to vector<1x8xf32>
    %44 = arith.addf %42, %43 : vector<1x8xf32>
    %c0_10 = arith.constant 0 : index
    %c0_11 = arith.constant 0 : index
    %45 = vector.load %arg2[%c0_10, %c0_11] : memref<1x8xf32, #tpu.memory_space<vmem>>, vector<1x8xf32>
    tpu.vector_store %arg2[%c0_10, %c0_11], %44 {strides = array<i32>} : memref<1x8xf32, #tpu.memory_space<vmem>>, vector<1x8xf32>,
    return
  }
}

</mosaic_0001>

<bundles_post_ra>
// kernel: tpu_custom_call.1
= control target key start
LH: loop header
LB: loop body
LE: loop exit
PB: predicated region body
PF: predicated region fallthrough
CT: control target
= control target key end

     0   :  { %7 = vsyncpa [#allocation3], 0  ;;  %s251_s0 = inlined_call_operand.hbm [shape: f32[3,32,128], index: 0, kind: input, shape index: {}]   ;;  %s252_s1 = inlined_call_operand.vmem [shape: f32[1,128], index: 1, kind: input, shape index: {}]   ;;  %s253_s2 = inlined_call_operand.hbm [shape: f32[1,8], index: 2, kind: output, shape index: {}]  }
   0x1   :  { %8 = vsyncpa [#allocation4], 0  ;;  %s214_s9 = smov [#allocation2]  }
   0x2   :  { %s14_s10 = sshll.u32 %s214_s9, 4  ;;  %s15_s10 = int_to_ptr.vmem [resolvable:$true] %s14_s10 }
   0x3   :  { %s178_s11 = scalar_lea.vmem %s15_s10, 1536  ;;  %p183_p1 = scmp.lt.s32.totalorder %s15_s10, %s15_s10 }
   0x4   :  { %p179_p0 = scmp.ne.s32.totalorder %s15_s10, %s178_s11  ;;  %p184_p2 = scmp.lt.s32.totalorder %s178_s11, %s178_s11 }
   0x6   :  { %p185_p3 = por %p184_p2, %p183_p1 }
   0x8   :  { %p186_p4 = pnand %p185_p3, %p179_p0 }
   0xa   :  { %189 = shalt.err (!%p186_p4)
}
   0xb   :  { %s215_s12 = smov 128   ;;  %s216_s13 = smov 8  }
   0xc   :  { %20 = dma.hbm_to_vmem [thread:$0]  %s251_s0, 1536, %s15_s10, [#allocation3], %s215_s12, %s215_s12, %s216_s13  }
   0xd   :  { %210 = dma.done.wait [#allocation3], 1536  }
   0xe   :  { %211 = vsyncadd [#allocation3], 4294965760  ;;  %v31_v0 = vld [vmem:[#allocation2 + $0x20] sm:$0xff]  ;;  %v32_v1 = vld [vmem:[#allocation2 + $0x28] sm:$0xff]  ;;  %s217_s17 = smov 124   ;;  %s218_s18 = smov 120   ;;  %v97_v53 = vlaneseq }
   0xf   :  { %v33_v2 = vld [vmem:[#allocation2 + $0x30] sm:$0xff]  ;;  %v48_v3 = vadd.f32 %v32_v1, %v31_v0  ;;  %v35_v4 = vld [vmem:[#allocation2 + $0x40] sm:$0xff]  ;;  %v36_v5 = vld [vmem:[#allocation2 + $0x48] sm:$0xff]  ;;  %s219_s19 = smov 116   ;;  %s221_s20 = smov 14   ;;  %vm104_vm0 = vcmask 8192  }
  0x10   :  { %v34_v6 = vld [vmem:[#allocation2 + $0x38] sm:$0xff]  ;;  %v37_v7 = vld [vmem:[#allocation2 + $0x50] sm:$0xff]  ;;  %v57_v8 = vadd.f32 %v36_v5, %v35_v4  ;;  %v27_v9 = vld [vmem:[#allocation2] sm:$0xff]  ;;  %v98_v54 = vshrl.u32 %v97_v53, 7  ;;  %s222_s21 = smov 112   ;;  %s223_s22 = smov 110  }
  0x11   :  { %v49_v10 = vadd.f32 %v48_v3, %v33_v2  ;;  %v38_v11 = vld [vmem:[#allocation2 + $0x58] sm:$0xff]  ;;  %v28_v12 = vld [vmem:[#allocation2 + $0x8] sm:$0xff]  ;;  %v29_v13 = vld [vmem:[#allocation2 + $0x10] sm:$0xff]  ;;  %s224_s23 = smov 102   ;;  %s225_s24 = smov 94   ;;  %vm140_vm1 = vcmask 57344  }
  0x12   :  { %v58_v14 = vadd.f32 %v57_v8, %v37_v7  ;;  %v39_v15 = vadd.f32 %v28_v12, %v27_v9  ;;  %v30_v17 = vld [vmem:[#allocation2 + $0x18] sm:$0xff]  ;;  %v26_v39 = vld [vmem:[%s252_s1] sm:$0x1]  ;;  %s220_s1 = smov 16   ;;  %v99_v55 = vsub.s32 0, %v98_v54  ;;  %s226_s25 = smov [#allocation5]  }
  0x13   :  { %v50_v16 = vadd.f32 %v49_v10, %v34_v6  ;;  %s148_s26 = sshll.u32 %s226_s25, 4  ;;  %s149_s26 = int_to_ptr.vmem [resolvable:$true] %s148_s26 }
  0x14   :  { %v59_v18 = vadd.f32 %v58_v14, %v38_v11  ;;  %v40_v19 = vadd.f32 %v39_v15, %v29_v13  ;;  %v126_v61 = vrot.slane %v26_v39, %v99_v55  ;;  %s190_s27 = scalar_lea.vmem %s149_s26, 16  ;;  %s194_s28 = scalar_lea.vmem %s149_s26, 32 }
  0x15   :  { %v51_v20 = vrot.slane %v50_v16, 4  ;;  %p191_p5 = scmp.ne.s32.totalorder %s149_s26, %s190_s27  ;;  %p195_p6 = scmp.lt.s32.totalorder %s149_s26, %s149_s26 }
  0x16   :  { %v60_v21 = vrot.slane %v59_v18, 4  ;;  %v41_v22 = vadd.f32 %v40_v19, %v30_v17  ;;  %p196_p7 = scmp.lt.s32.totalorder %s194_s28, %s190_s27 }
  0x17   :  { %v52_v23 = vadd.f32 %v51_v20, %v50_v16 }
  0x18   :  { %v61_v24 = vadd.f32 %v60_v21, %v59_v18  ;;  %v42_v25 = vrot.slane %v41_v22, 4  ;;  %p197_p8 = por %p196_p7, %p195_p6 }
  0x19   :  { %v53_v26 = vrot.slane %v52_v23, 2 }
  0x1a   :  { %v62_v27 = vrot.slane %v61_v24, 2  ;;  %v43_v28 = vadd.f32 %v42_v25, %v41_v22  ;;  %p198_p9 = pnand %p197_p8, %p191_p5 }
  0x1b   :  { %v54_v29 = vadd.f32 %v53_v26, %v52_v23 }
  0x1c   :  { %v63_v30 = vadd.f32 %v62_v27, %v61_v24  ;;  %v44_v31 = vrot.slane %v43_v28, 2 }
  0x1d   :  { %v55_v32 = vrot.slane %v54_v29, 1 }
  0x1e   :  { %v64_v33 = vrot.slane %v63_v30, 1  ;;  %v45_v34 = vadd.f32 %v44_v31, %v43_v28 }
  0x1f   :  { %v56_v35 = vadd.f32 %v55_v32, %v54_v29 }
  0x20   :  { %v46_v36 = vrot.slane %v45_v34, 1  ;;  %v65_v37 = vadd.f32 %v64_v33, %v63_v30 }
  0x21   :  { %68 = vadd.xlane.f32.xlu0 %v56_v35 }
  0x22   :  { %v47_v38 = vadd.f32 %v46_v36, %v45_v34 }
  0x24   :  { %66 = vadd.xlane.f32.xlu1 %v47_v38 }
  0x25   :  { %70 = vadd.xlane.f32.xlu0 %v65_v37 }
  0xaa   :  { %v69_v40 = vpop.xlane.xlu0 %68 }
  0xab   :  { %v73_v41 = vmul.f32 %v69_v40, %v26_v39 }
  0xad   :  { %75 = vrot.lane.b32.xlu1 %v73_v41, %s217_s17  ;;  %v67_v44 = vpop.xlane.xlu1 %66 }
  0xae   :  { %v71_v42 = vpop.xlane.xlu0 %70  ;;  %v72_v45 = vmul.f32 %v67_v44, %v26_v39 }
  0xaf   :  { %v79_v43 = vmul.f32 %v71_v42, %v26_v39 }
  0xb1   :  { %81 = vrot.lane.b32.xlu0 %v79_v43, %s218_s18  ;;  %87 = vrot.lane.b32.xlu1 %v26_v39, %s219_s19 }
 0x11f   :  { %v76_v46 = vpop.permute.xlu1 %75 }
 0x120   :  { %v78_v47 = vadd.f32 %v76_v46, %v72_v45 }
 0x123   :  { %v82_v48 = vpop.permute.xlu0 %81  ;;  %v88_v50 = vpop.permute.xlu1 %87 }
 0x124   :  { %v84_v49 = vadd.f32 %v82_v48, %v78_v47 }
 0x126   :  { %v85_v51 = vmul.f32 0.00022956841, %v84_v49 }
 0x128   :  { %v90_v52 = vadd.f32 %v88_v50, %v85_v51 }
 0x12a   :  { %92 = vrot.lane.b32.xlu1 %v90_v52, %s220_s1 }
 0x12e   :  { %108 = vrot.lane.b32.xlu1 %v90_v52, %s221_s20 }
 0x19c   :  { %v93_v56 = vpop.permute.xlu1 %92 }
 0x19d   :  { %v95_v57 = vmul.f32 %v93_v56, %v26_v39 }
 0x19f   :  { %v100_v58 = vrot.slane %v95_v57, %v99_v55 }
 0x1a0   :  { %v109_v59 = vpop.permute.xlu1 %108 }
 0x1a1   :  { %v111_v60 = vmul.f32 %v109_v59, %v26_v39  ;;  %101 = vrot.lane.b32.xlu0 %v100_v58, %s222_s21 }
 0x1a3   :  { %v116_v62 = vrot.slane %v111_v60, %v99_v55 }
 0x1a5   :  { %117 = vrot.lane.b32.xlu1 %v116_v62, %s222_s21  ;;  %127 = vrot.lane.b32.xlu0 %v126_v61, %s223_s22 }
 0x213   :  { %v102_v63 = vpop.permute.xlu0 %101 }
 0x214   :  { %v105_v0 = vsel %vm104_vm0, %v102_v63, 0.0 }
 0x215   :  { %106 = vadd.xlane.f32.xlu0 %v105_v0 }
 0x217   :  { %v118_v1 = vpop.permute.xlu1 %117  ;;  %v128_v3 = vpop.permute.xlu0 %127 }
 0x218   :  { %v120_v2 = vsel %vm104_vm0, %v118_v1, 0.0 }
 0x219   :  { %121 = vadd.xlane.f32.xlu1 %v120_v2 }
 0x22a   :  { %131 = vrot.lane.b32.xlu1 %v126_v61, %s224_s23 }
 0x22b   :  { %136 = vrot.lane.b32.xlu0 %v126_v61, %s225_s24 }
 0x29e   :  { %v107_v5 = vpop.xlane.xlu0 %106 }
 0x29f   :  { %v130_v7 = vmul.f32 %v128_v3, %v107_v5 }
 0x2a2   :  { %v122_v4 = vpop.xlane.xlu1 %121  ;;  %v137_v9 = vpop.permute.xlu0 %136 }
 0x2a6   :  { %v132_v6 = vpop.permute.xlu1 %131 }
 0x2a7   :  { %v134_v8 = vmul.f32 %v132_v6, %v122_v4 }
 0x2a9   :  { %v135_v10 = vadd.f32 %v134_v8, %v130_v7 }
 0x2ab   :  { %v139_v11 = vadd.f32 %v137_v9, %v135_v10 }
 0x2ad   :  { %141 = vst.msk [vmem:[#allocation5] sm:$0x1] %vm140_vm1, %v139_v11 }
 0x2ae   :  { %201 = shalt.err (!%p198_p9)
}
 0x2af   :  { %151 = dma.vmem_to_hbm [thread:$0]  %s149_s26, 16, %s253_s2, [#allocation4]  }
 0x2b0   :  { %212 = dma.done.wait [#allocation4], 16  }
 0x2b1   :  { %213 = vsyncadd [#allocation4], 4294967280 }
 0x2b2   :  { %155 = vsyncpa [#allocation3], 1 }
 0x2b3   :  { %156 = vsyncpa [#allocation4], 1 }

</bundles_post_ra>
